<compile_context>
chip_gen: v7x
topology: tpu7x:2x2x1
jax: 0.10.0
libtpu: 0.0.40
codegen_flags: <defaults>
</compile_context>

<pallas_src>
import jax
import jax.numpy as jnp
from jax.experimental import pallas as pl
from jax.experimental.pallas import tpu as pltpu

LANE = 128  # TPU lane width


def _round_up(x, m):
    return ((x + m - 1) // m) * m


def mlp_kernel(x_ref,
               w1_ref, b1_ref,
               w2_ref, b2_ref,
               w3_ref, b3_ref,
               w4_ref, b4_ref,
               w5_ref, b5_ref,
               o_ref):
    f32 = jnp.float32
    bf16 = jnp.bfloat16

    x = x_ref[...]                                  # (TB, in_dim) bf16

    # ---- layer 1 (+ReLU): K = in_dim (4) -> do it on the VPU, not the MXU ----
    w1 = w1_ref[...]                                # (in_dim, H1) bf16
    h = jnp.broadcast_to(b1_ref[...], (x.shape[0], w1.shape[1])).astype(f32)
    for k in range(x.shape[1]):                     # static unroll, in_dim == 4
        h = h + x[:, k:k + 1].astype(f32) * w1[k:k + 1, :].astype(f32)
    h = jnp.maximum(h, 0.0)

    # ---- layer 2 (+ReLU): MXU, bf16 inputs / f32 accumulation ----
    h = jnp.maximum(
        jnp.dot(h.astype(bf16), w2_ref[...], preferred_element_type=f32)
        + b2_ref[...], 0.0)

    # ---- layer 3 (+ReLU) ----
    h = jnp.maximum(
        jnp.dot(h.astype(bf16), w3_ref[...], preferred_element_type=f32)
        + b3_ref[...], 0.0)

    # ---- layer 4 (no ReLU, matches the reference forward) ----
    h = jnp.dot(h.astype(bf16), w4_ref[...], preferred_element_type=f32) + b4_ref[...]

    # ---- layer 5 (output columns lane-padded to 128 for dense vst) ----
    h = jnp.dot(h.astype(bf16), w5_ref[...], preferred_element_type=f32) + b5_ref[...]

    o_ref[...] = h.astype(o_ref.dtype)


def mlp_forward(x, params, *, block_rows=1024):
    """x: [B, input_dim] float32.
    params: list of (W, b) with W: (in, out) float32, b: (1, out) float32."""
    B, in_dim = x.shape
    out_dim = params[-1][0].shape[1]

    # Lane-pad the final layer so output writeback uses full 128-lane stores.
    w5, b5 = params[-1]
    pad_cols = LANE - out_dim
    w5p = jnp.pad(w5, ((0, 0), (0, pad_cols)))
    b5p = jnp.pad(b5, ((0, 0), (0, pad_cols)))
    padded_params = list(params[:-1]) + [(w5p, b5p)]

    # Batch tiling: TB rows per grid step; pad batch so grid divides exactly.
    TB = min(block_rows, _round_up(B, 8))
    B_pad = _round_up(B, TB)
    xb = x.astype(jnp.bfloat16)
    if B_pad != B:
        xb = jnp.pad(xb, ((0, B_pad - B), (0, 0)))

    flat_params = []
    in_specs = [pl.BlockSpec((TB, in_dim), lambda i: (i, 0))]
    for w, b in padded_params:
        wb = w.astype(jnp.bfloat16)     # bf16 weights for the MXU
        bf = b.astype(jnp.float32)      # f32 biases, added on f32 accumulators
        flat_params.extend([wb, bf])
        in_specs.append(pl.BlockSpec(wb.shape, lambda i: (0, 0)))
        in_specs.append(pl.BlockSpec(bf.shape, lambda i: (0, 0)))

    out = pl.pallas_call(
        mlp_kernel,
        out_shape=jax.ShapeDtypeStruct((B_pad, LANE), jnp.float32),
        grid=(B_pad // TB,),
        in_specs=in_specs,
        out_specs=pl.BlockSpec((TB, LANE), lambda i: (i, 0)),
        compiler_params=pltpu.CompilerParams(
            dimension_semantics=("parallel",)),   # megacore split on v7x
    )(xb, *flat_params)

    # Slice off batch padding (padded rows contain bias/ReLU garbage) and the
    # lane padding of the output layer.
    return out[:B, :out_dim]


def init_params(key, dims):
    """Deterministic init mimicking nn.Linear's U(-1/sqrt(in), 1/sqrt(in))."""
    params = []
    for d_in, d_out in zip(dims[:-1], dims[1:]):
        kw, kb, key = jax.random.split(key, 3)
        bound = 1.0 / jnp.sqrt(jnp.float32(d_in))
        w = jax.random.uniform(kw, (d_in, d_out), jnp.float32, -bound, bound)
        b = jax.random.uniform(kb, (1, d_out), jnp.float32, -bound, bound)
        params.append((w, b))
    return params


def ref_forward(x, params):
    """Plain-JAX reference that mirrors the kernel's bf16/f32 mixed precision."""
    f32, bf16 = jnp.float32, jnp.bfloat16
    xb = x.astype(bf16)

    # layer 1 (+ReLU): exact f32 products of bf16-rounded values
    w1, b1 = params[0]
    h = jnp.dot(xb.astype(f32), w1.astype(bf16).astype(f32),
                precision=jax.lax.Precision.HIGHEST) + b1
    h = jnp.maximum(h, 0.0)

    for i, (w, b) in enumerate(params[1:], start=1):
        h = jnp.dot(h.astype(bf16), w.astype(bf16),
                    preferred_element_type=f32) + b
        if i < 3:                      # ReLU after linear2, linear3 only
            h = jnp.maximum(h, 0.0)
    return h


if __name__ == "__main__":
    input_dim, output_dim = 4, 3        # iris: 4 features, 3 classes
    batch = 8
    dims = [input_dim, 64, 32, 32, 16, output_dim]

    key = jax.random.PRNGKey(0)
    kx, kp = jax.random.split(key)
    x = jax.random.normal(kx, (batch, input_dim), dtype=jnp.float32)
    params = init_params(kp, dims)

    out = mlp_forward(x, params)
    jax.block_until_ready(out)

    ref = ref_forward(x, params)
    assert out.shape == (batch, output_dim), f"bad output shape {out.shape}"
    assert jnp.allclose(out, ref, atol=1e-2, rtol=1e-2), "mismatch vs JAX reference"

    print("KERNEL_OK")
</pallas_src>

<mosaic_0001>
module attributes {stable_mosaic.version = 11 : i64} {
  func.func @mlp_kernel(%arg0: i32, %arg1: memref<8x4xbf16, #tpu.memory_space<vmem>>, %arg2: memref<4x64xbf16, #tpu.memory_space<vmem>>, %arg3: memref<1x64xf32, #tpu.memory_space<vmem>>, %arg4: memref<64x32xbf16, #tpu.memory_space<vmem>>, %arg5: memref<1x32xf32, #tpu.memory_space<vmem>>, %arg6: memref<32x32xbf16, #tpu.memory_space<vmem>>, %arg7: memref<1x32xf32, #tpu.memory_space<vmem>>, %arg8: memref<32x16xbf16, #tpu.memory_space<vmem>>, %arg9: memref<1x16xf32, #tpu.memory_space<vmem>>, %arg10: memref<16x128xbf16, #tpu.memory_space<vmem>>, %arg11: memref<1x128xf32, #tpu.memory_space<vmem>>, %arg12: memref<8x128xf32, #tpu.memory_space<vmem>>) attributes {dimension_semantics = [#tpu.dimension_semantics<parallel>], iteration_bounds = array<i64: 1>, scalar_prefetch = 0 : i64, scratch_operands = 0 : i64, tpu.core_type = #tpu.core_type<tc>, window_params = [{transform_indices = @transform_0, window_bounds = array<i64: 8, 4>}, {pipeline_mode = #tpu.pipeline_mode<synchronous>, transform_indices = @transform_1, window_bounds = array<i64: 4, 64>}, {pipeline_mode = #tpu.pipeline_mode<synchronous>, transform_indices = @transform_2, window_bounds = array<i64: 1, 64>}, {pipeline_mode = #tpu.pipeline_mode<synchronous>, transform_indices = @transform_3, window_bounds = array<i64: 64, 32>}, {pipeline_mode = #tpu.pipeline_mode<synchronous>, transform_indices = @transform_4, window_bounds = array<i64: 1, 32>}, {pipeline_mode = #tpu.pipeline_mode<synchronous>, transform_indices = @transform_5, window_bounds = array<i64: 32, 32>}, {pipeline_mode = #tpu.pipeline_mode<synchronous>, transform_indices = @transform_6, window_bounds = array<i64: 1, 32>}, {pipeline_mode = #tpu.pipeline_mode<synchronous>, transform_indices = @transform_7, window_bounds = array<i64: 32, 16>}, {pipeline_mode = #tpu.pipeline_mode<synchronous>, transform_indices = @transform_8, window_bounds = array<i64: 1, 16>}, {pipeline_mode = #tpu.pipeline_mode<synchronous>, transform_indices = @transform_9, window_bounds = array<i64: 16, 128>}, {pipeline_mode = #tpu.pipeline_mode<synchronous>, transform_indices = @transform_10, window_bounds = array<i64: 1, 128>}, {transform_indices = @transform_11, window_bounds = array<i64: 8, 128>}]} {
    %c0 = arith.constant 0 : index
    %c0_0 = arith.constant 0 : index
    %0 = vector.load %arg1[%c0, %c0_0] : memref<8x4xbf16, #tpu.memory_space<vmem>>, vector<8x4xbf16>
    %c0_1 = arith.constant 0 : index
    %c0_2 = arith.constant 0 : index
    %1 = vector.load %arg2[%c0_1, %c0_2] : memref<4x64xbf16, #tpu.memory_space<vmem>>, vector<4x64xbf16>
    %c0_3 = arith.constant 0 : index
    %c0_4 = arith.constant 0 : index
    %2 = vector.load %arg3[%c0_3, %c0_4] : memref<1x64xf32, #tpu.memory_space<vmem>>, vector<1x64xf32>
    %3 = vector.shape_cast %2 : vector<1x64xf32> to vector<1x64xf32>
    %4 = vector.broadcast %3 : vector<1x64xf32> to vector<8x64xf32>
    %5 = vector.extract_strided_slice %0 {offsets = [0, 0], sizes = [8, 1], strides = [1, 1]} : vector<8x4xbf16> to vector<8x1xbf16>
    %6 = arith.extf %5 : vector<8x1xbf16> to vector<8x1xf32>
    %7 = vector.extract_strided_slice %1 {offsets = [0, 0], sizes = [1, 64], strides = [1, 1]} : vector<4x64xbf16> to vector<1x64xbf16>
    %8 = arith.extf %7 : vector<1x64xbf16> to vector<1x64xf32>
    %9 = vector.broadcast %6 : vector<8x1xf32> to vector<8x64xf32>
    %10 = vector.broadcast %8 : vector<1x64xf32> to vector<8x64xf32>
    %11 = arith.mulf %9, %10 : vector<8x64xf32>
    %12 = arith.addf %4, %11 : vector<8x64xf32>
    %13 = vector.extract_strided_slice %0 {offsets = [0, 1], sizes = [8, 1], strides = [1, 1]} : vector<8x4xbf16> to vector<8x1xbf16>
    %14 = arith.extf %13 : vector<8x1xbf16> to vector<8x1xf32>
    %15 = vector.extract_strided_slice %1 {offsets = [1, 0], sizes = [1, 64], strides = [1, 1]} : vector<4x64xbf16> to vector<1x64xbf16>
    %16 = arith.extf %15 : vector<1x64xbf16> to vector<1x64xf32>
    %17 = vector.broadcast %14 : vector<8x1xf32> to vector<8x64xf32>
    %18 = vector.broadcast %16 : vector<1x64xf32> to vector<8x64xf32>
    %19 = arith.mulf %17, %18 : vector<8x64xf32>
    %20 = arith.addf %12, %19 : vector<8x64xf32>
    %21 = vector.extract_strided_slice %0 {offsets = [0, 2], sizes = [8, 1], strides = [1, 1]} : vector<8x4xbf16> to vector<8x1xbf16>
    %22 = arith.extf %21 : vector<8x1xbf16> to vector<8x1xf32>
    %23 = vector.extract_strided_slice %1 {offsets = [2, 0], sizes = [1, 64], strides = [1, 1]} : vector<4x64xbf16> to vector<1x64xbf16>
    %24 = arith.extf %23 : vector<1x64xbf16> to vector<1x64xf32>
    %25 = vector.broadcast %22 : vector<8x1xf32> to vector<8x64xf32>
    %26 = vector.broadcast %24 : vector<1x64xf32> to vector<8x64xf32>
    %27 = arith.mulf %25, %26 : vector<8x64xf32>
    %28 = arith.addf %20, %27 : vector<8x64xf32>
    %29 = vector.extract_strided_slice %0 {offsets = [0, 3], sizes = [8, 1], strides = [1, 1]} : vector<8x4xbf16> to vector<8x1xbf16>
    %30 = arith.extf %29 : vector<8x1xbf16> to vector<8x1xf32>
    %31 = vector.extract_strided_slice %1 {offsets = [3, 0], sizes = [1, 64], strides = [1, 1]} : vector<4x64xbf16> to vector<1x64xbf16>
    %32 = arith.extf %31 : vector<1x64xbf16> to vector<1x64xf32>
    %33 = vector.broadcast %30 : vector<8x1xf32> to vector<8x64xf32>
    %34 = vector.broadcast %32 : vector<1x64xf32> to vector<8x64xf32>
    %35 = arith.mulf %33, %34 : vector<8x64xf32>
    %36 = arith.addf %28, %35 : vector<8x64xf32>
    %cst = arith.constant 0.000000e+00 : f32
    %37 = vector.broadcast %cst : f32 to vector<8x64xf32>
    %38 = arith.maximumf %36, %37 : vector<8x64xf32>
    %39 = arith.truncf %38 : vector<8x64xf32> to vector<8x64xbf16>
    %c0_5 = arith.constant 0 : index
    %c0_6 = arith.constant 0 : index
    %40 = vector.load %arg4[%c0_5, %c0_6] : memref<64x32xbf16, #tpu.memory_space<vmem>>, vector<64x32xbf16>
    %cst_7 = arith.constant dense<0.000000e+00> : vector<8x32xf32>
    %41 = tpu.matmul %39, %40, %cst_7 {dimension_numbers = #tpu.dot_dimension_numbers<[1], [0], [0], [1], [0, 0, 1, 1], [], []>} : vector<8x64xbf16>, vector<64x32xbf16>, vector<8x32xf32> -> vector<8x32xf32>
    %c0_8 = arith.constant 0 : index
    %c0_9 = arith.constant 0 : index
    %42 = vector.load %arg5[%c0_8, %c0_9] : memref<1x32xf32, #tpu.memory_space<vmem>>, vector<1x32xf32>
    %43 = vector.broadcast %42 : vector<1x32xf32> to vector<8x32xf32>
    %44 = arith.addf %41, %43 : vector<8x32xf32>
    %cst_10 = arith.constant 0.000000e+00 : f32
    %45 = vector.broadcast %cst_10 : f32 to vector<8x32xf32>
    %46 = arith.maximumf %44, %45 : vector<8x32xf32>
    %47 = arith.truncf %46 : vector<8x32xf32> to vector<8x32xbf16>
    %c0_11 = arith.constant 0 : index
    %c0_12 = arith.constant 0 : index
    %48 = vector.load %arg6[%c0_11, %c0_12] : memref<32x32xbf16, #tpu.memory_space<vmem>>, vector<32x32xbf16>
    %cst_13 = arith.constant dense<0.000000e+00> : vector<8x32xf32>
    %49 = tpu.matmul %47, %48, %cst_13 {dimension_numbers = #tpu.dot_dimension_numbers<[1], [0], [0], [1], [0, 0, 1, 1], [], []>} : vector<8x32xbf16>, vector<32x32xbf16>, vector<8x32xf32> -> vector<8x32xf32>
    %c0_14 = arith.constant 0 : index
    %c0_15 = arith.constant 0 : index
    %50 = vector.load %arg7[%c0_14, %c0_15] : memref<1x32xf32, #tpu.memory_space<vmem>>, vector<1x32xf32>
    %51 = vector.broadcast %50 : vector<1x32xf32> to vector<8x32xf32>
    %52 = arith.addf %49, %51 : vector<8x32xf32>
    %cst_16 = arith.constant 0.000000e+00 : f32
    %53 = vector.broadcast %cst_16 : f32 to vector<8x32xf32>
    %54 = arith.maximumf %52, %53 : vector<8x32xf32>
    %55 = arith.truncf %54 : vector<8x32xf32> to vector<8x32xbf16>
    %c0_17 = arith.constant 0 : index
    %c0_18 = arith.constant 0 : index
    %56 = vector.load %arg8[%c0_17, %c0_18] : memref<32x16xbf16, #tpu.memory_space<vmem>>, vector<32x16xbf16>
    %cst_19 = arith.constant dense<0.000000e+00> : vector<8x16xf32>
    %57 = tpu.matmul %55, %56, %cst_19 {dimension_numbers = #tpu.dot_dimension_numbers<[1], [0], [0], [1], [0, 0, 1, 1], [], []>} : vector<8x32xbf16>, vector<32x16xbf16>, vector<8x16xf32> -> vector<8x16xf32>
    %c0_20 = arith.constant 0 : index
    %c0_21 = arith.constant 0 : index
    %58 = vector.load %arg9[%c0_20, %c0_21] : memref<1x16xf32, #tpu.memory_space<vmem>>, vector<1x16xf32>
    %59 = vector.broadcast %58 : vector<1x16xf32> to vector<8x16xf32>
    %60 = arith.addf %57, %59 : vector<8x16xf32>
    %61 = arith.truncf %60 : vector<8x16xf32> to vector<8x16xbf16>
    %c0_22 = arith.constant 0 : index
    %c0_23 = arith.constant 0 : index
    %62 = vector.load %arg10[%c0_22, %c0_23] : memref<16x128xbf16, #tpu.memory_space<vmem>>, vector<16x128xbf16>
    %cst_24 = arith.constant dense<0.000000e+00> : vector<8x128xf32>
    %63 = tpu.matmul %61, %62, %cst_24 {dimension_numbers = #tpu.dot_dimension_numbers<[1], [0], [0], [1], [0, 0, 1, 1], [], []>} : vector<8x16xbf16>, vector<16x128xbf16>, vector<8x128xf32> -> vector<8x128xf32>
    %c0_25 = arith.constant 0 : index
    %c0_26 = arith.constant 0 : index
    %64 = vector.load %arg11[%c0_25, %c0_26] : memref<1x128xf32, #tpu.memory_space<vmem>>, vector<1x128xf32>
    %65 = vector.broadcast %64 : vector<1x128xf32> to vector<8x128xf32>
    %66 = arith.addf %63, %65 : vector<8x128xf32>
    %c0_27 = arith.constant 0 : index
    %c0_28 = arith.constant 0 : index
    %67 = vector.load %arg12[%c0_27, %c0_28] : memref<8x128xf32, #tpu.memory_space<vmem>>, vector<8x128xf32>
    tpu.vector_store %arg12[%c0_27, %c0_28], %66 {strides = array<i32>} : memref<8x128xf32, #tpu.memory_space<vmem>>, vector<8x128xf32>,
    return
  }
  func.func @transform_0(%arg0: i32) -> (i32, i32) {
    %c0_i32 = arith.constant 0 : i32
    %c0_i32_0 = arith.constant 0 : i32
    return %arg0, %c0_i32 : i32, i32
  }
  func.func @transform_1(%arg0: i32) -> (i32, i32) {
    %c0_i32 = arith.constant 0 : i32
    %c0_i32_0 = arith.constant 0 : i32
    %c0_i32_1 = arith.constant 0 : i32
    return %c0_i32, %c0_i32_0 : i32, i32
  }
  func.func @transform_2(%arg0: i32) -> (i32, i32) {
    %c0_i32 = arith.constant 0 : i32
    %c0_i32_0 = arith.constant 0 : i32
    %c0_i32_1 = arith.constant 0 : i32
    return %c0_i32, %c0_i32_0 : i32, i32
  }
  func.func @transform_3(%arg0: i32) -> (i32, i32) {
    %c0_i32 = arith.constant 0 : i32
    %c0_i32_0 = arith.constant 0 : i32
    %c0_i32_1 = arith.constant 0 : i32
    return %c0_i32, %c0_i32_0 : i32, i32
  }
  func.func @transform_4(%arg0: i32) -> (i32, i32) {
    %c0_i32 = arith.constant 0 : i32
    %c0_i32_0 = arith.constant 0 : i32
    %c0_i32_1 = arith.constant 0 : i32
    return %c0_i32, %c0_i32_0 : i32, i32
  }
  func.func @transform_5(%arg0: i32) -> (i32, i32) {
    %c0_i32 = arith.constant 0 : i32
    %c0_i32_0 = arith.constant 0 : i32
    %c0_i32_1 = arith.constant 0 : i32
    return %c0_i32, %c0_i32_0 : i32, i32
  }
  func.func @transform_6(%arg0: i32) -> (i32, i32) {
    %c0_i32 = arith.constant 0 : i32
    %c0_i32_0 = arith.constant 0 : i32
    %c0_i32_1 = arith.constant 0 : i32
    return %c0_i32, %c0_i32_0 : i32, i32
  }
  func.func @transform_7(%arg0: i32) -> (i32, i32) {
    %c0_i32 = arith.constant 0 : i32
    %c0_i32_0 = arith.constant 0 : i32
    %c0_i32_1 = arith.constant 0 : i32
    return %c0_i32, %c0_i32_0 : i32, i32
  }
  func.func @transform_8(%arg0: i32) -> (i32, i32) {
    %c0_i32 = arith.constant 0 : i32
    %c0_i32_0 = arith.constant 0 : i32
    %c0_i32_1 = arith.constant 0 : i32
    return %c0_i32, %c0_i32_0 : i32, i32
  }
  func.func @transform_9(%arg0: i32) -> (i32, i32) {
    %c0_i32 = arith.constant 0 : i32
    %c0_i32_0 = arith.constant 0 : i32
    %c0_i32_1 = arith.constant 0 : i32
    return %c0_i32, %c0_i32_0 : i32, i32
  }
  func.func @transform_10(%arg0: i32) -> (i32, i32) {
    %c0_i32 = arith.constant 0 : i32
    %c0_i32_0 = arith.constant 0 : i32
    %c0_i32_1 = arith.constant 0 : i32
    return %c0_i32, %c0_i32_0 : i32, i32
  }
  func.func @transform_11(%arg0: i32) -> (i32, i32) {
    %c0_i32 = arith.constant 0 : i32
    %c0_i32_0 = arith.constant 0 : i32
    return %arg0, %c0_i32 : i32, i32
  }
}

</mosaic_0001>

<bundles_post_ra>
// kernel: tpu_custom_call.1
= control target key start
LH: loop header
LB: loop body
LE: loop exit
PB: predicated region body
PF: predicated region fallthrough
CT: control target
= control target key end

     0   :  { %v499_v1 = vmov 0   ;;  %v500_v3 = vmov 2   ;;  %v501_v5 = vmov 0.0   ;;  %v502_v6 = vmov 1   ;;  %s645_s0 = inlined_call_operand.vmem [shape: bf16[8,4], index: 0, kind: input, shape index: {}]   ;;  %s646_s1 = inlined_call_operand.vmem [shape: bf16[4,64], index: 1, kind: input, shape index: {}]   ;;  %s647_s2 = inlined_call_operand.vmem [shape: f32[1,64], index: 2, kind: input, shape index: {}]   ;;  %s648_s3 = inlined_call_operand.vmem [shape: bf16[64,32], index: 3, kind: input, shape index: {}]   ;;  %s649_s4 = inlined_call_operand.vmem [shape: f32[1,32], index: 4, kind: input, shape index: {}]   ;;  %s650_s5 = inlined_call_operand.vmem [shape: bf16[32,32], index: 5, kind: input, shape index: {}]   ;;  %s651_s6 = inlined_call_operand.vmem [shape: f32[1,32], index: 6, kind: input, shape index: {}]   ;;  %s652_s7 = inlined_call_operand.vmem [shape: bf16[32,16], index: 7, kind: input, shape index: {}]   ;;  %s653_s8 = inlined_call_operand.vmem [shape: f32[1,16], index: 8, kind: input, shape index: {}]   ;;  %s654_s9 = inlined_call_operand.vmem [shape: bf16[16,128], index: 9, kind: input, shape index: {}]   ;;  %s655_s10 = inlined_call_operand.vmem [shape: f32[1,128], index: 10, kind: input, shape index: {}]   ;;  %s656_s11 = inlined_call_operand.hbm [shape: f32[8,128], index: 11, kind: output, shape index: {}]  }
   0x1   :  { %v40_v0 = vld [vmem:[%s645_s0] sm:$0xf]  ;;  %461 = vset.pattern.permute.xlu0 %v499_v1  ;;  %463 = vset.pattern.permute.xlu1 %v500_v3  ;;  %v503_v7 = vmov 3   ;;  %v467_v8 = vld [vmem:[%s648_s3 + $0x8] sm:$0xff]  }
   0x2   :  { %v49_v2 = vunpack.c.l.bf16 %v40_v0  ;;  %v466_v4 = vld [vmem:[%s648_s3] sm:$0xff]   ;;  %420 = vmatprep.subr.bf16.mxu0 %v501_v5  ;;  %432 = vmatprep.subr.bf16.mxu1 %v501_v5 }
   0x3   :  { %421 = vmatpush3.bf16.msra.mxu0 %v466_v4 }
   0x4   :  { %53 = vperm.xlu0 %461, %v49_v2   ;;  %73 = vperm.xlu1 %463, %v49_v2  }
   0x5   :  { %422 = vmatprep.subr.bf16.mxu0 %v501_v5 }
   0x7   :  { %423 = vmatpush3.bf16.msra.mxu0 %v467_v8 }
   0x8   :  { %462 = vset.pattern.permute.xlu0 %v502_v6  ;;  %464 = vset.pattern.permute.xlu1 %v503_v7 }
   0x9   :  { %63 = vperm.xlu0 %462, %v49_v2   ;;  %83 = vperm.xlu1 %464, %v49_v2  }
   0xa   :  { %16 = vsyncpa [#allocation3], 0  ;;  %424 = vmatprep.subr.bf16.mxu0 %v501_v5  ;;  %v468_v9 = vld [vmem:[%s648_s3 + $0x10] sm:$0xff]   ;;  %v469_v10 = vld [vmem:[%s648_s3 + $0x18] sm:$0xff]   ;;  %vm504_vm0 = vmmov 0   ;;  %v56_v11 = vlaneseq  ;;  %vm133_vm1 = vcmask 523264  }
   0xb   :  { %425 = vmatpush3.bf16.msra.mxu0 %v468_v9  ;;  %428 = vmatprep.mubr.msk.bf16.mxu0 %vm504_vm0, %v501_v5  ;;  %v41_v13 = vld [vmem:[%s646_s1] sm:$0x3]  ;;  %v471_v39 = vld [vmem:[%s650_s5 + $0x8] sm:$0xff]   ;;  %vm202_vm2 = vcmask 261120   ;;  %vm330_vm3 = vcmask 130048   ;;  %s505_s0 = smov [#allocation2]  }
   0xc   :  { %426 = vmatprep.subr.bf16.mxu0 %v501_v5  ;;  %436 = vmatprep.mubr.msk.bf16.mxu1 %vm504_vm0, %v501_v5  ;;  %v57_v12 = vshrl.u32 %v56_v11, 7  ;;  %v50_v14 = vunpack.c.l.bf16 %v41_v13  ;;  %v389_v24 = vld [vmem:[%s647_s2] ss:$0 sm:$0xff]  ;;  %v473_v49 = vld [vmem:[%s652_s7 + $0x8] sm:$0xff]   ;;  %s381_s21 = sshll.u32 %s505_s0, 4  ;;  %s382_s21 = int_to_ptr.vmem [resolvable:$true] %s381_s21 }
   0xd   :  { %465 = vset.pattern.permute.xlu0 %v503_v7  ;;  %v470_v38 = vld [vmem:[%s650_s5] sm:$0xff]   ;;  %p480_p1 = scmp.lt.s32.totalorder %s382_s21, %s382_s21 }
   0xe   :  { %v58_v15 = vsub.s32 0, %v57_v12  ;;  %v68_v17 = vsub.s32 1, %v57_v12  ;;  %v78_v19 = vsub.s32 2, %v57_v12  ;;  %v88_v21 = vsub.s32 3, %v57_v12  ;;  %433 = vmatpush3.bf16.msra.mxu1 %v470_v38  ;;  %v390_v40 = vld [vmem:[%s649_s4] ss:$0 sm:$0xff] }
   0xf   :  { %427 = vmatpush3.bf16.msra.mxu0 %v469_v10  ;;  %434 = vmatprep.subr.bf16.mxu1 %v501_v5  ;;  %v472_v47 = vld [vmem:[%s652_s7] sm:$0xff]  }
  0x10   :  { %448 = vmatprep.subr.bf16.mxu0 %v501_v5  ;;  %v59_v16 = vrot.slane %v50_v14, %v58_v15  ;;  %v69_v23 = vrot.slane %v50_v14, %v68_v17  ;;  %v79_v25 = vrot.slane %v50_v14, %v78_v19  ;;  %v89_v26 = vrot.slane %v50_v14, %v88_v21  ;;  %v474_v50 = vld [vmem:[%s654_s9] sm:$0xff]  }
  0x11   :  { %v396_v51 = vld [vmem:[%s651_s6] ss:$0 sm:$0xff] }
  0x12   :  { %435 = vmatpush3.bf16.msra.mxu1 %v471_v39  ;;  %v400_v59 = vld [vmem:[%s653_s8] ss:$0 sm:$0xff]  ;;  %s475_s8 = scalar_lea.vmem %s382_s21, 128 }
  0x13   :  { %440 = vmatprep.subr.bf16.mxu1 %v501_v5  ;;  %v404_v2 = vld [vmem:[%s655_s10] ss:$0 sm:$0xff]  ;;  %p476_p0 = scmp.ne.s32.totalorder %s382_s21, %s475_s8  ;;  %p481_p2 = scmp.lt.s32.totalorder %s475_s8, %s475_s8 }
  0x15   :  { %p482_p3 = por %p481_p2, %p480_p1 }
  0x17   :  { %p483_p4 = pnand %p482_p3, %p476_p0 }
  0x83   :  { %v54_v18 = vpop.permute.xlu0 %53  ;;  %v74_v20 = vpop.permute.xlu1 %73 }
  0x84   :  { %v60_v22 = vmul.f32 %v59_v16, %v54_v18  ;;  %v80_v31 = vmul.f32 %v79_v25, %v74_v20 }
  0x86   :  { %v61_v29 = vadd.f32 %v389_v24, %v60_v22 }
  0x88   :  { %v64_v27 = vpop.permute.xlu0 %63  ;;  %v84_v28 = vpop.permute.xlu1 %83 }
  0x89   :  { %v70_v30 = vmul.f32 %v69_v23, %v64_v27  ;;  %v90_v33 = vmul.f32 %v89_v26, %v84_v28 }
  0x8b   :  { %v71_v32 = vadd.f32 %v70_v30, %v61_v29 }
  0x8d   :  { %v81_v34 = vadd.f32 %v80_v31, %v71_v32 }
  0x8f   :  { %v91_v35 = vadd.f32 %v90_v33, %v81_v34 }
  0x91   :  { %v92_v36 = vmax.f32 %v91_v35, 0.0 }
  0x93   :  { %v93_v37 = vpack.c.bf16 %v92_v36, %v92_v36 }
  0x95   :  { %429 = vmatmul.mubr.msk.bf16.vlgmr.msra.gmra.mrb[0].mxu0 %vm133_vm1, %v93_v37 }
  0x96   :  { %450 = vmatprep.mubr.msk.bf16.mxu0 %vm504_vm0, %v501_v5  ;;  %449 = vmatpush3.bf16.msra.mxu0 %v474_v50 }
 0x168   :  { %v171_v41 = vpop.f32.mrb[0].mxu0 }
 0x169   :  { %v172_v42 = vadd.f32 %v390_v40, %v171_v41  ;;  %v430_v43 = vpop.f32.mrb[1].mxu0 }
 0x16a   :  { %v174_v44 = vpop.f32.mrb[2].mxu0 }
 0x16b   :  { %v177_v45 = vmax.f32 %v172_v42, 0.0  ;;  %v431_v46 = vpop.f32.mrb[3].mxu0 }
 0x16d   :  { %v178_v48 = vpack.c.bf16 %v177_v45, %v177_v45 }
 0x16f   :  { %437 = vmatmul.mubr.msk.bf16.vlgmr.msra.gmra.mrb[0].mxu1 %vm202_vm2, %v178_v48 }
 0x170   :  { %441 = vmatpush3.bf16.msra.mxu1 %v472_v47  ;;  %444 = vmatprep.mubr.msk.bf16.mxu1 %vm504_vm0, %v501_v5 }
 0x171   :  { %442 = vmatprep.subr.bf16.mxu1 %v501_v5 }
 0x174   :  { %443 = vmatpush3.bf16.msra.mxu1 %v473_v49 }
 0x242   :  { %v240_v52 = vpop.f32.mrb[0].mxu1 }
 0x243   :  { %v241_v53 = vadd.f32 %v396_v51, %v240_v52  ;;  %v438_v54 = vpop.f32.mrb[1].mxu1 }
 0x244   :  { %v243_v55 = vpop.f32.mrb[2].mxu1 }
 0x245   :  { %v246_v56 = vmax.f32 %v241_v53, 0.0  ;;  %v439_v57 = vpop.f32.mrb[3].mxu1 }
 0x247   :  { %v247_v58 = vpack.c.bf16 %v246_v56, %v246_v56 }
 0x249   :  { %445 = vmatmul.mubr.msk.bf16.vlgmr.msra.gmra.mrb[4].mxu1 %vm202_vm2, %v247_v58 }
 0x31c   :  { %v308_v60 = vpop.f32.mrb[4].mxu1 }
 0x31d   :  { %v309_v61 = vadd.f32 %v400_v59, %v308_v60  ;;  %v446_v62 = vpop.f32.mrb[5].mxu1 }
 0x31e   :  { %v311_v63 = vpop.f32.mrb[6].mxu1 }
 0x31f   :  { %v314_v0 = vpack.c.bf16 %v309_v61, %v309_v61  ;;  %v447_v1 = vpop.f32.mrb[7].mxu1 }
 0x321   :  { %451 = vmatmul.mubr.msk.bf16.vlgmr.msra.gmra.mrb[4].mxu0 %vm330_vm3, %v314_v0 }
 0x3f4   :  { %v368_v3 = vpop.f32.mrb[4].mxu0 }
 0x3f5   :  { %v369_v4 = vadd.f32 %v404_v2, %v368_v3  ;;  %v452_v5 = vpop.f32.mrb[5].mxu0 }
 0x3f6   :  { %v371_v6 = vpop.f32.mrb[6].mxu0 }
 0x3f7   :  { %374 = vst [vmem:[#allocation2] sm:$0xff] %v369_v4  ;;  %v453_v7 = vpop.f32.mrb[7].mxu0 }
 0x3f8   :  { %486 = shalt.err (!%p483_p4)
}
 0x3f9   :  { %s487_s10 = scalar_lea.hbm %s656_s11, 128 }
 0x3fa   :  { %p488_p5 = scmp.ne.s32.totalorder %s656_s11, %s487_s10  ;;  %p491_p6 = scmp.lt.u32.totalorder %s487_s10, %s656_s11 }
 0x3fc   :  { %p493_p7 = pnand %p491_p6, %p488_p5 }
 0x3fe   :  { %496 = shalt.err (!%p493_p7)
}
 0x3ff   :  { %384 = dma.vmem_to_hbm [thread:$0]  %s382_s21, 128, %s656_s11, [#allocation3]  }
 0x400   :  { %497 = dma.done.wait [#allocation3], 128  }
 0x401   :  { %498 = vsyncadd [#allocation3], 4294967168 }
 0x402   :  { %388 = vsyncpa [#allocation3], 1 }

</bundles_post_ra>
